<compile_context>
chip_gen: v7x
topology: tpu7x:2x2x1
jax: 0.10.0
libtpu: 0.0.40
codegen_flags: <defaults>
</compile_context>

<pallas_src>
import functools

import jax
import jax.numpy as jnp
from jax.experimental import pallas as pl
from jax.experimental.pallas import tpu as pltpu


def _center_kernel(feat_ref, label_ref, out_ref, *, tile_c):
    """One (TB, TC) feature tile.

    feat_ref : VMEM (TB, TC)   feature, native dtype
    label_ref: VMEM (TB, 1)    int32 labels (resident across the class sweep)
    out_ref  : VMEM (TB, 128)  f32 per-(row, lane) partial sums; doubles as the
               accumulator (its block index is constant in j, so it stays
               resident in VMEM across the whole class sweep of this row tile).
    """
    j = pl.program_id(1)

    @pl.when(j == 0)
    def _init():
        out_ref[...] = jnp.zeros_like(out_ref)

    tb = out_ref.shape[0]
    # Label position relative to the first column of this tile (avoids adding
    # j*TC to a full-tile iota every step).
    lbl_rel = label_ref[...] - j * tile_c                        # (TB, 1) int32
    col = jax.lax.broadcasted_iota(jnp.int32, (tb, 128), 1)      # lane index

    # Walk the 128-lane groups of the tile.  For a given row at most one lane
    # group can match (labels are one-hot), so a chain of selects (VPU compare
    # + select only: no adds, no XLU, no full-tile upcast) collects
    # feature[b, label[b]] into lane label[b] % 128.
    picked = jnp.zeros((tb, 128), feat_ref.dtype)
    for k in range(tile_c // 128):
        picked = jnp.where(col == lbl_rel - k * 128,
                           feat_ref[:, k * 128:(k + 1) * 128],
                           picked)

    out_ref[...] += picked.astype(jnp.float32)


def _round_up(x, m):
    return ((x + m - 1) // m) * m


def _pick_tile(dim, target, multiple):
    """Pick a tile for one axis.

    Returns (tile, padded_dim) with tile % multiple == 0, tile >= multiple,
    padded_dim % tile == 0 and padded_dim >= dim.  Padding is only introduced
    when no exact divisor <= target exists, so a tile can never silently grow
    to the full (possibly huge) dimension and blow the VMEM budget.
    """
    multiple = int(multiple)
    target = max(int(target), multiple)
    if dim <= target:
        t = _round_up(dim, multiple)
        return t, t
    t = (target // multiple) * multiple
    while t >= multiple:
        if dim % t == 0:
            return t, dim
        t -= multiple
    t = (target // multiple) * multiple
    return t, _round_up(dim, t)


def center_loss(feature, label, scale, *, tb_target=512, tc_target=None,
                feature_buffers=2):
    """feature: (B, C) float, label: (B,) int.  Returns scalar float32 loss.

    feature_buffers > 2 requests deeper pipelining of the feature stream
    (useful on v7x where per-tile DMA time is short relative to per-step
    overhead); the default (2) is plain double-buffering.
    """
    B, C = feature.shape
    itemsize = jnp.dtype(feature.dtype).itemsize
    # Sublane multiple matching the dtype's native packed tiling.
    sub_mult = {4: 8, 2: 16, 1: 32}.get(itemsize, 8)
    if tc_target is None:
        # Keep the streamed feature tile around 8 MiB regardless of dtype.
        tc_target = max(
            128, ((8 << 20) // (max(tb_target, sub_mult) * itemsize)) // 128 * 128)

    TB, Bp = _pick_tile(B, tb_target, sub_mult)
    TC, Cp = _pick_tile(C, tc_target, 128)

    label2d = jnp.asarray(label).reshape(-1).astype(jnp.int32).reshape(B, 1)
    if Cp != C or Bp != B:
        # Zero-pad columns/rows.  Padded columns sit above every valid label;
        # padded rows get label -1, which never matches a lane index, so padded
        # entries contribute exactly 0.  (Note: out-of-range labels also
        # silently contribute 0, unlike torch.scatter_ which raises.)
        feature = jnp.pad(feature, ((0, Bp - B), (0, Cp - C)))
    if Bp != B:
        label2d = jnp.pad(label2d, ((0, Bp - B), (0, 0)), constant_values=-1)

    nb = Bp // TB
    nc = Cp // TC

    # Feature stream spec; optionally deepen its pipeline (v7x tuning knob).
    nbuf = 2
    feat_kwargs = {}
    if feature_buffers is not None and int(feature_buffers) != 2:
        nbuf = int(feature_buffers)
        feat_kwargs["pipeline_mode"] = pl.Buffered(nbuf)
    feat_spec = pl.BlockSpec((TB, TC), lambda i, j: (i, j), **feat_kwargs)

    # Conservative VMEM budget: feature buffers + label + output accumulator
    # (label / output lane dims pad to 128 in VMEM).
    needed = (nbuf * TB * TC * itemsize) + 2 * TB * 128 * 4 + 2 * TB * 128 * 4
    vmem_limit = max(32 << 20, int(needed * 5 // 4) + (1 << 20))

    kernel = functools.partial(_center_kernel, tile_c=TC)

    partials = pl.pallas_call(
        kernel,
        out_shape=jax.ShapeDtypeStruct((Bp, 128), jnp.float32),
        grid=(nb, nc),
        in_specs=[
            feat_spec,
            # Labels: constant in the class axis -> fetched once per row tile.
            pl.BlockSpec((TB, 1), lambda i, j: (i, 0)),
        ],
        # Per-row-tile partial sums; resident across the class sweep and used
        # directly as the accumulator (lane-dense, unmasked stores).
        out_specs=pl.BlockSpec((TB, 128), lambda i, j: (i, 0)),
        compiler_params=pltpu.CompilerParams(
            # Row tiles are independent -> shardable across v7x's 2 cores; the
            # class axis accumulates into the resident output block.
            dimension_semantics=("parallel", "arbitrary"),
            vmem_limit_bytes=vmem_limit,
        ),
    )(feature, label2d)

    # Tiny XLA epilogue: global reduce + affine.
    total = jnp.sum(partials, dtype=jnp.float32)
    return 2.0 - 2.0 * total / (jnp.float32(scale) * jnp.float32(B))


def center_loss_ref(feature, label, scale):
    """Pure-JAX reference mirroring the PyTorch scatter_ formulation."""
    B = feature.shape[0]
    one_hot = jax.nn.one_hot(label, feature.shape[1], dtype=jnp.float32)
    feature_s = feature.astype(jnp.float32) * one_hot / scale
    return 2.0 - 2.0 * jnp.sum(feature_s) / B


if __name__ == "__main__":
    key = jax.random.PRNGKey(0)
    k1, k2, k3, k4 = jax.random.split(key, 4)
    scale = 30.0  # stands in for opt.train.scale

    # Case 1: small shapes consistent with the module forward (single tile,
    # C padded 32 -> 128 internally).
    B, C = 8, 32
    feature = jax.random.normal(k1, (B, C), dtype=jnp.float32)
    label = jax.random.randint(k2, (B,), 0, C, dtype=jnp.int32)
    loss = center_loss(feature, label, scale)
    jax.block_until_ready(loss)
    ref = center_loss_ref(feature, label, scale)
    assert jnp.allclose(loss, ref, atol=1e-5, rtol=1e-5), (loss, ref)

    # Case 2: force a 2x2 grid (small tile targets) to exercise the per-row-tile
    # init/accumulate path and the "parallel" batch axis.
    B2, C2 = 16, 256
    feature2 = jax.random.normal(k3, (B2, C2), dtype=jnp.float32)
    label2 = jax.random.randint(k4, (B2,), 0, C2, dtype=jnp.int32)
    loss2 = center_loss(feature2, label2, scale, tb_target=8, tc_target=128)
    jax.block_until_ready(loss2)
    ref2 = center_loss_ref(feature2, label2, scale)
    assert jnp.allclose(loss2, ref2, atol=1e-5, rtol=1e-5), (loss2, ref2)

    # Case 3: native bf16 streaming with dtype-aware row padding (B 8 -> 16) and
    # column padding (C 32 -> 128); selection happens in bf16, accumulation in f32.
    feature3 = feature.astype(jnp.bfloat16)
    loss3 = center_loss(feature3, label, scale)
    jax.block_until_ready(loss3)
    ref3 = center_loss_ref(feature3, label, scale)
    assert jnp.allclose(loss3, ref3, atol=1e-5, rtol=1e-5), (loss3, ref3)

    # Case 4: default tiling on C=256 -> exercises the multi-lane-group select
    # chain (two 128-lane chunks inside one tile).
    loss4 = center_loss(feature2, label2, scale)
    jax.block_until_ready(loss4)
    assert jnp.allclose(loss4, ref2, atol=1e-5, rtol=1e-5), (loss4, ref2)

    print("KERNEL_OK")
</pallas_src>

<mosaic_0001>
module attributes {stable_mosaic.version = 11 : i64} {
  func.func @_center_kernel(%arg0: i32, %arg1: i32, %arg2: memref<8x128xf32, #tpu.memory_space<vmem>>, %arg3: memref<8x1xi32, #tpu.memory_space<vmem>>, %arg4: memref<8x128xf32, #tpu.memory_space<vmem>>) attributes {dimension_semantics = [#tpu.dimension_semantics<parallel>, #tpu.dimension_semantics<arbitrary>], iteration_bounds = array<i64: 1, 1>, scalar_prefetch = 0 : i64, scratch_operands = 0 : i64, tpu.core_type = #tpu.core_type<tc>, window_params = [{transform_indices = @transform_0, window_bounds = array<i64: 8, 128>}, {transform_indices = @transform_1, window_bounds = array<i64: 8, 1>}, {transform_indices = @transform_2, window_bounds = array<i64: 8, 128>}]} {
    %c0_i32 = arith.constant 0 : i32
    %0 = arith.cmpi eq, %arg1, %c0_i32 : i32
    %1 = arith.extui %0 : i1 to i32
    %c0_i32_0 = arith.constant 0 : i32
    %2 = arith.cmpi ne, %1, %c0_i32_0 : i32
    scf.if %2 {
      %cst_9 = arith.constant 0.000000e+00 : f32
      %18 = vector.broadcast %cst_9 : f32 to vector<8x128xf32>
      %c0_10 = arith.constant 0 : index
      %c0_11 = arith.constant 0 : index
      %19 = vector.load %arg4[%c0_10, %c0_11] : memref<8x128xf32, #tpu.memory_space<vmem>>, vector<8x128xf32>
      tpu.vector_store %arg4[%c0_10, %c0_11], %18 {strides = array<i32>} : memref<8x128xf32, #tpu.memory_space<vmem>>, vector<8x128xf32>,
    } else {
    }
    %c0 = arith.constant 0 : index
    %c0_1 = arith.constant 0 : index
    %3 = vector.load %arg3[%c0, %c0_1] : memref<8x1xi32, #tpu.memory_space<vmem>>, vector<8x1xi32>
    %c128_i32 = arith.constant 128 : i32
    %4 = arith.muli %arg1, %c128_i32 : i32
    %5 = vector.broadcast %4 : i32 to vector<8x1xi32>
    %6 = arith.subi %3, %5 : vector<8x1xi32>
    %7 = tpu.iota {dimensions = array<i32: 1>} : vector<8x128xi32>
    %cst = arith.constant 0.000000e+00 : f32
    %8 = vector.broadcast %cst : f32 to vector<8x128xf32>
    %c0_i32_2 = arith.constant 0 : i32
    %9 = vector.broadcast %c0_i32_2 : i32 to vector<8x1xi32>
    %10 = arith.subi %6, %9 : vector<8x1xi32>
    %11 = vector.broadcast %10 : vector<8x1xi32> to vector<8x128xi32>
    %12 = arith.cmpi eq, %7, %11 : vector<8x128xi32>
    %c0_3 = arith.constant 0 : index
    %c0_4 = arith.constant 0 : index
    %13 = vector.load %arg2[%c0_3, %c0_4] : memref<8x128xf32, #tpu.memory_space<vmem>>, vector<8x128xf32>
    %14 = arith.select %12, %13, %8 : vector<8x128xi1>, vector<8x128xf32>
    %c0_5 = arith.constant 0 : index
    %c0_6 = arith.constant 0 : index
    %15 = vector.load %arg4[%c0_5, %c0_6] : memref<8x128xf32, #tpu.memory_space<vmem>>, vector<8x128xf32>
    %16 = arith.addf %15, %14 : vector<8x128xf32>
    %c0_7 = arith.constant 0 : index
    %c0_8 = arith.constant 0 : index
    %17 = vector.load %arg4[%c0_7, %c0_8] : memref<8x128xf32, #tpu.memory_space<vmem>>, vector<8x128xf32>
    tpu.vector_store %arg4[%c0_7, %c0_8], %16 {strides = array<i32>} : memref<8x128xf32, #tpu.memory_space<vmem>>, vector<8x128xf32>,
    return
  }
  func.func @transform_0(%arg0: i32, %arg1: i32) -> (i32, i32) {
    %c0_i32 = arith.constant 0 : i32
    return %arg0, %arg1 : i32, i32
  }
  func.func @transform_1(%arg0: i32, %arg1: i32) -> (i32, i32) {
    %c0_i32 = arith.constant 0 : i32
    %c0_i32_0 = arith.constant 0 : i32
    return %arg0, %c0_i32 : i32, i32
  }
  func.func @transform_2(%arg0: i32, %arg1: i32) -> (i32, i32) {
    %c0_i32 = arith.constant 0 : i32
    %c0_i32_0 = arith.constant 0 : i32
    return %arg0, %c0_i32 : i32, i32
  }
}

</mosaic_0001>

<bundles_post_ra>
// kernel: tpu_custom_call.1
= control target key start
LH: loop header
LB: loop body
LE: loop exit
PB: predicated region body
PF: predicated region fallthrough
CT: control target
= control target key end

     0   :  { %s109_s0 = inlined_call_operand.vmem [shape: f32[8,128], index: 0, kind: input, shape index: {}]   ;;  %s110_s1 = inlined_call_operand.vmem [shape: s32[8,1], index: 1, kind: input, shape index: {}]   ;;  %s111_s2 = inlined_call_operand.hbm [shape: f32[8,128], index: 2, kind: output, shape index: {}]  }
   0x1   :  { %v17_v0 = vld [vmem:[%s110_s1] sm:$0xff] }
   0x2   :  { %7 = vsyncpa [#allocation3], 0  ;;  %v74_v1 = vmov 0   ;;  %v21_v2 = vlaneseq  ;;  %v27_v4 = vld [vmem:[%s109_s0] sm:$0xff]  ;;  %s75_s13 = smov [#allocation2]  }
   0x3   :  { %49 = vset.pattern.permute.xlu0 %v74_v1  ;;  %s38_s14 = sshll.u32 %s75_s13, 4  ;;  %s39_s14 = int_to_ptr.vmem [resolvable:$true] %s38_s14 }
   0x4   :  { %24 = vperm.xlu0 %49, %v17_v0   ;;  %v22_v3 = vand.u32 127, %v21_v2  ;;  %s50_s15 = scalar_lea.vmem %s39_s14, 128  ;;  %p55_p1 = scmp.lt.s32.totalorder %s39_s14, %s39_s14 }
   0x5   :  { %p51_p0 = scmp.ne.s32.totalorder %s39_s14, %s50_s15  ;;  %p56_p2 = scmp.lt.s32.totalorder %s50_s15, %s50_s15 }
   0x7   :  { %p57_p3 = por %p56_p2, %p55_p1 }
   0x9   :  { %p58_p4 = pnand %p57_p3, %p51_p0 }
  0x83   :  { %v25_v5 = vpop.permute.xlu0 %24 }
  0x84   :  { %vm26_vm0 = vcmp.eq.s32.totalorder %v22_v3, %v25_v5 }
  0x85   :  { %v28_v6 = vsel %vm26_vm0, %v27_v4, 0.0 }
  0x86   :  { %31 = vst [vmem:[#allocation2] sm:$0xff] %v28_v6 }
  0x87   :  { %61 = shalt.err (!%p58_p4)
}
  0x88   :  { %s62_s17 = scalar_lea.hbm %s111_s2, 128 }
  0x89   :  { %p63_p5 = scmp.ne.s32.totalorder %s111_s2, %s62_s17  ;;  %p66_p6 = scmp.lt.u32.totalorder %s62_s17, %s111_s2 }
  0x8b   :  { %p68_p7 = pnand %p66_p6, %p63_p5 }
  0x8d   :  { %71 = shalt.err (!%p68_p7)
}
  0x8e   :  { %41 = dma.vmem_to_hbm [thread:$0]  %s39_s14, 128, %s111_s2, [#allocation3]  }
  0x8f   :  { %72 = dma.done.wait [#allocation3], 128  }
  0x90   :  { %73 = vsyncadd [#allocation3], 4294967168 }
  0x91   :  { %45 = vsyncpa [#allocation3], 1 }

</bundles_post_ra>
